<compile_context>
chip_gen: v7x
topology: tpu7x:2x2x1
jax: 0.10.0
libtpu: 0.0.40
codegen_flags: <defaults>
</compile_context>

<pallas_src>
import functools
import math

import jax
import jax.numpy as jnp
from jax.experimental import pallas as pl
from jax.experimental.pallas import tpu as pltpu

LN_EPS = 1e-12                      # HF BertConfig default layer_norm_eps
VMEM_LIMIT = 48 * 1024 * 1024       # <= v7x 64 MiB; raise to ~96 MiB on v5e/v6e
NEG_BIG = -1e9                      # additive mask bias (safe if a row is all-masked)


# ----------------------------- in-kernel math helpers -----------------------------

def _gelu(x):
    # TODO(synk): tanh-approx GELU (EUP tanh slot); HF "gelu" is the exact erf form,
    # max abs deviation ~1e-3.
    c = math.sqrt(2.0 / math.pi)
    return 0.5 * x * (1.0 + jnp.tanh(c * (x + 0.044715 * x * x * x)))


def _layernorm(y, g, b):
    mu = jnp.mean(y, axis=-1, keepdims=True)
    var = jnp.mean(jnp.square(y - mu), axis=-1, keepdims=True)
    return (y - mu) * jax.lax.rsqrt(var + LN_EPS) * g + b


def _pick_tile(dim, target, align):
    """Largest multiple of `align` that divides `dim` and is <= target (else full dim)."""
    if dim <= target:
        return dim
    t = (target // align) * align
    while t >= align:
        if dim % t == 0:
            return t
        t -= align
    return dim


def _rows_per_step(B, S, target_rows, max_group):
    """Batch rows packed per grid step: divisor of B, G*S <= target_rows, and
    (when B >= 2) at least 2 grid steps remain so both v7x TensorCores get work."""
    cap = min(B, max_group)
    if B >= 2:
        cap = min(cap, B // 2)
    best = 1
    for g in range(1, cap + 1):
        if B % g == 0 and g * S <= target_rows:
            best = g
    return best


# ----------------------------- kernels -----------------------------

def _embed_kernel(e_ref, w_ref, b_ref, pt_ref, g_ref, be_ref, o_ref):
    # comb_proj + position/token_type add + LayerNorm, one row tile per step.
    y = jnp.dot(e_ref[...], w_ref[...], preferred_element_type=jnp.float32)
    y = y + b_ref[...] + pt_ref[...]
    o_ref[...] = _layernorm(y, g_ref[...], be_ref[...]).astype(o_ref.dtype)


def _attn_block_kernel(h_ref, wq_ref, bq_ref, wk_ref, bk_ref, wv_ref, bv_ref,
                       m_ref, wo_ref, bo_ref, g_ref, b_ref, o_ref,
                       *, n_heads, n_rows, seq_len, scale):
    # Fused: full-width QKV projection + per-(row,head) attention + single
    # full-width output projection + residual + LayerNorm.
    x = h_ref[...]                                       # (G*S, H) bf16
    H = x.shape[1]
    dh = H // n_heads

    # Full-width projections: one (G*S,H)@(H,H) matmul each (MXU N dim = H).
    q = (jnp.dot(x, wq_ref[...], preferred_element_type=jnp.float32)
         + bq_ref[...]) * scale
    k = jnp.dot(x, wk_ref[...], preferred_element_type=jnp.float32) + bk_ref[...]
    v = jnp.dot(x, wv_ref[...], preferred_element_type=jnp.float32) + bv_ref[...]
    qb = q.astype(jnp.bfloat16)
    kb = k.astype(jnp.bfloat16)
    vb = v.astype(jnp.bfloat16)

    # Per-(batch-row, head) scores/softmax/ctx; only (S,S) + (S,dh) live per iter.
    ctx_rows = []
    for g in range(n_rows):
        r0 = g * seq_len
        bias = m_ref[g]                                  # (1, S) f32 additive key mask
        head_ctx = []
        for hd in range(n_heads):
            c0 = hd * dh
            qh = qb[r0:r0 + seq_len, c0:c0 + dh]
            kh = kb[r0:r0 + seq_len, c0:c0 + dh]
            vh = vb[r0:r0 + seq_len, c0:c0 + dh]
            # q @ k^T without materializing a transpose; f32 scores + f32 mask bias.
            s = jax.lax.dot_general(qh, kh, (((1,), (1,)), ((), ())),
                                    preferred_element_type=jnp.float32) + bias
            s = s - jnp.max(s, axis=-1, keepdims=True)
            p = jnp.exp(s)
            p = p * pl.reciprocal(jnp.sum(p, axis=-1, keepdims=True), approx=True)
            head_ctx.append(jnp.dot(p.astype(jnp.bfloat16), vh,
                                    preferred_element_type=jnp.float32))   # (S, dh)
        ctx_rows.append(jnp.concatenate(head_ctx, axis=-1))                # (S, H)
    ctx = ctx_rows[0] if n_rows == 1 else jnp.concatenate(ctx_rows, axis=0)

    # One full-width output projection (MXU K dim = H).
    attn = jnp.dot(ctx.astype(jnp.bfloat16), wo_ref[...],
                   preferred_element_type=jnp.float32) + bo_ref[...]
    y = attn + x.astype(jnp.float32)
    o_ref[...] = _layernorm(y, g_ref[...], b_ref[...]).astype(o_ref.dtype)


def _ffn_body(h_ref, wi_ref, bi_ref, wo2_ref, acc_ref):
    # Shared K-tiled FFN step: f32 accumulator, GELU per intermediate tile.
    @pl.when(pl.program_id(1) == 0)
    def _():
        acc_ref[...] = jnp.zeros_like(acc_ref)
    x = h_ref[...]                                       # (tm, H) bf16, resident
    inter = jnp.dot(x, wi_ref[...], preferred_element_type=jnp.float32) + bi_ref[...]
    inter = _gelu(inter)
    acc_ref[...] += jnp.dot(inter.astype(jnp.bfloat16), wo2_ref[...],
                            preferred_element_type=jnp.float32)
    return x


def _ffn_kernel(h_ref, wi_ref, bi_ref, wo2_ref, bo2_ref, g_ref, b_ref,
                o_ref, acc_ref):
    x = _ffn_body(h_ref, wi_ref, bi_ref, wo2_ref, acc_ref)

    @pl.when(pl.program_id(1) == pl.num_programs(1) - 1)
    def _():
        y = acc_ref[...] + bo2_ref[...] + x.astype(jnp.float32)
        o_ref[...] = _layernorm(y, g_ref[...], b_ref[...]).astype(o_ref.dtype)


def _ffn_fc_kernel(h_ref, wi_ref, bi_ref, wo2_ref, bo2_ref, g_ref, b_ref,
                   fcw_ref, fcb_ref, o_ref, logit_ref, acc_ref):
    # Last-layer variant: fuse fc(H -> 1) into the finalize step (no extra HBM pass).
    x = _ffn_body(h_ref, wi_ref, bi_ref, wo2_ref, acc_ref)

    @pl.when(pl.program_id(1) == pl.num_programs(1) - 1)
    def _():
        y = acc_ref[...] + bo2_ref[...] + x.astype(jnp.float32)
        y_ln = _layernorm(y, g_ref[...], b_ref[...])
        o_ref[...] = y_ln.astype(o_ref.dtype)
        logit_ref[...] = (jnp.sum(y_ln * fcw_ref[...], axis=-1, keepdims=True)
                          + fcb_ref[...])


# ----------------------------- pallas_call wrappers -----------------------------

def pallas_embed(embed_flat, comb_w, comb_b, pos_tok_tile, gamma, beta, *, tm):
    M, K = embed_flat.shape
    H = comb_w.shape[1]
    return pl.pallas_call(
        _embed_kernel,
        out_shape=jax.ShapeDtypeStruct((M, H), jnp.bfloat16),
        grid=(M // tm,),
        in_specs=[
            pl.BlockSpec((tm, K), lambda i: (i, 0)),     # embed rows (bf16)
            pl.BlockSpec((K, H), lambda i: (0, 0)),      # comb_w (bf16), resident
            pl.BlockSpec((1, H), lambda i: (0, 0)),      # comb_b
            pl.BlockSpec((tm, H), lambda i: (0, 0)),     # pos+token_type slab (f32)
            pl.BlockSpec((1, H), lambda i: (0, 0)),      # LN gamma
            pl.BlockSpec((1, H), lambda i: (0, 0)),      # LN beta
        ],
        out_specs=pl.BlockSpec((tm, H), lambda i: (i, 0)),
        compiler_params=pltpu.CompilerParams(
            dimension_semantics=("parallel",), vmem_limit_bytes=VMEM_LIMIT),
    )(embed_flat, comb_w, comb_b, pos_tok_tile, gamma, beta)


def pallas_attention_block(h, mask_bias, layer, *, B, S, nh):
    M, H = h.shape
    dh = H // nh
    # Pack batch rows per step when S is small (bounded unroll: G*nh <= ~32).
    G = _rows_per_step(B, S, 256, max(1, min(8, 32 // nh)))
    rows = G * S
    scale = 1.0 / math.sqrt(dh)
    kern = functools.partial(_attn_block_kernel, n_heads=nh, n_rows=G,
                             seq_len=S, scale=scale)
    return pl.pallas_call(
        kern,
        out_shape=jax.ShapeDtypeStruct((M, H), jnp.bfloat16),
        grid=(B // G,),
        in_specs=[
            pl.BlockSpec((rows, H), lambda i: (i, 0)),    # h (residual input, bf16)
            pl.BlockSpec((H, H), lambda i: (0, 0)),       # wq (bf16)
            pl.BlockSpec((1, H), lambda i: (0, 0)),       # bq
            pl.BlockSpec((H, H), lambda i: (0, 0)),       # wk (bf16)
            pl.BlockSpec((1, H), lambda i: (0, 0)),       # bk
            pl.BlockSpec((H, H), lambda i: (0, 0)),       # wv (bf16)
            pl.BlockSpec((1, H), lambda i: (0, 0)),       # bv
            pl.BlockSpec((G, 1, S), lambda i: (i, 0, 0)),  # additive mask bias (f32)
            pl.BlockSpec((H, H), lambda i: (0, 0)),       # wo (bf16)
            pl.BlockSpec((1, H), lambda i: (0, 0)),       # bo
            pl.BlockSpec((1, H), lambda i: (0, 0)),       # LN1 gamma
            pl.BlockSpec((1, H), lambda i: (0, 0)),       # LN1 beta
        ],
        out_specs=pl.BlockSpec((rows, H), lambda i: (i, 0)),
        compiler_params=pltpu.CompilerParams(
            dimension_semantics=("parallel",), vmem_limit_bytes=VMEM_LIMIT),
    )(h, layer["wq"], layer["bq"], layer["wk"], layer["bk"],
      layer["wv"], layer["bv"], mask_bias, layer["wo"], layer["bo"],
      layer["ln1_g"], layer["ln1_b"])


def pallas_ffn_block(h, layer, fc_w=None, fc_b=None):
    M, H = h.shape
    I = layer["wi"].shape[1]
    tm = _pick_tile(M, 512, 8)        # row tile
    tn = _pick_tile(I, 1024, 128)     # intermediate (reduction) tile
    grid = (M // tm, I // tn)
    in_specs = [
        pl.BlockSpec((tm, H), lambda i, k: (i, 0)),    # h (bf16, resident across k)
        pl.BlockSpec((H, tn), lambda i, k: (0, k)),    # wi tile (bf16)
        pl.BlockSpec((1, tn), lambda i, k: (0, k)),    # bi tile
        pl.BlockSpec((tn, H), lambda i, k: (k, 0)),    # wo2 tile (bf16)
        pl.BlockSpec((1, H), lambda i, k: (0, 0)),     # bo2
        pl.BlockSpec((1, H), lambda i, k: (0, 0)),     # LN2 gamma
        pl.BlockSpec((1, H), lambda i, k: (0, 0)),     # LN2 beta
    ]
    args = [h, layer["wi"], layer["bi"], layer["wo2"], layer["bo2"],
            layer["ln2_g"], layer["ln2_b"]]
    cp = pltpu.CompilerParams(dimension_semantics=("parallel", "arbitrary"),
                              vmem_limit_bytes=VMEM_LIMIT)
    scratch = [pltpu.VMEM((tm, H), jnp.float32)]

    if fc_w is None:
        return pl.pallas_call(
            _ffn_kernel,
            out_shape=jax.ShapeDtypeStruct((M, H), jnp.bfloat16),
            grid=grid, in_specs=in_specs,
            out_specs=pl.BlockSpec((tm, H), lambda i, k: (i, 0)),
            scratch_shapes=scratch, compiler_params=cp,
        )(*args)

    # Last encoder layer: fuse fc(H -> 1) into the finalize step.
    in_specs = in_specs + [pl.BlockSpec((1, H), lambda i, k: (0, 0)),   # fc_w
                           pl.BlockSpec((1, 1), lambda i, k: (0, 0))]   # fc_b
    args = args + [fc_w, fc_b]
    h_out, logits = pl.pallas_call(
        _ffn_fc_kernel,
        out_shape=(jax.ShapeDtypeStruct((M, H), jnp.bfloat16),
                   jax.ShapeDtypeStruct((M, 1), jnp.float32)),
        grid=grid, in_specs=in_specs,
        out_specs=[pl.BlockSpec((tm, H), lambda i, k: (i, 0)),
                   pl.BlockSpec((tm, 1), lambda i, k: (i, 0))],
        scratch_shapes=scratch, compiler_params=cp,
    )(*args)
    return h_out, logits


# ----------------------------- parameters -----------------------------

def init_params(key, cfg):
    H = cfg["hidden_dim"]
    Hd3 = H // 3
    I = cfg["intermediate"]
    keys = iter(jax.random.split(key, 128))

    def nrm(shape):
        return (0.02 * jax.random.normal(next(keys), shape)).astype(jnp.float32)

    def zeros(shape):
        return jnp.zeros(shape, jnp.float32)

    def ones(shape):
        return jnp.ones(shape, jnp.float32)

    params = {
        "emb_interaction": nrm((3, Hd3)),
        "emb_test": nrm((cfg["n_test"] + 1, Hd3)),
        "emb_question": nrm((cfg["n_questions"] + 1, Hd3)),
        "emb_tag": nrm((cfg["n_tag"] + 1, Hd3)),
        "comb_w": nrm((4 * Hd3, H)).astype(jnp.bfloat16),
        "comb_b": zeros((1, H)),
        "pos_emb": nrm((cfg["max_seq_len"], H)),
        "tok_emb": nrm((2, H)),          # token_type embeddings (type_vocab_size=2)
        "emb_ln_g": ones((1, H)),
        "emb_ln_b": zeros((1, H)),
        "fc_w": nrm((1, H)),
        "fc_b": zeros((1, 1)),
        "layers": [],
    }
    for _ in range(cfg["n_layers"]):
        params["layers"].append({
            # (in, out) layouts; output columns of wq/wk/wv (and input rows of wo)
            # are grouped by head, matching the in-kernel head slicing.
            "wq": nrm((H, H)).astype(jnp.bfloat16), "bq": zeros((1, H)),
            "wk": nrm((H, H)).astype(jnp.bfloat16), "bk": zeros((1, H)),
            "wv": nrm((H, H)).astype(jnp.bfloat16), "bv": zeros((1, H)),
            "wo": nrm((H, H)).astype(jnp.bfloat16), "bo": zeros((1, H)),
            "ln1_g": ones((1, H)), "ln1_b": zeros((1, H)),
            "wi": nrm((H, I)).astype(jnp.bfloat16), "bi": zeros((1, I)),
            "wo2": nrm((I, H)).astype(jnp.bfloat16), "bo2": zeros((1, H)),
            "ln2_g": ones((1, H)), "ln2_b": zeros((1, H)),
        })
    return params


# ----------------------------- forward pass -----------------------------

def bert_forward(params, test, question, tag, mask, interaction, cfg):
    B, S = interaction.shape
    H = cfg["hidden_dim"]
    nh = cfg["n_heads"]
    M = B * S

    # --- categorical embeddings + concat (gather stays at the XLA level) ---
    e_int = jnp.take(params["emb_interaction"], interaction, axis=0)
    e_test = jnp.take(params["emb_test"], test, axis=0)
    e_q = jnp.take(params["emb_question"], question, axis=0)
    e_tag = jnp.take(params["emb_tag"], tag, axis=0)
    embed = jnp.concatenate([e_int, e_test, e_q, e_tag],
                            axis=2).reshape(M, -1).astype(jnp.bfloat16)

    # position + token_type (token_type_id = 0) slab, tiled to the embed row tile
    pos_tok = params["pos_emb"][:S] + params["tok_emb"][0][None, :]          # (S, H)
    G_e = _rows_per_step(B, S, 512, B)
    tm_e = G_e * S
    pos_tok_tile = jnp.tile(pos_tok, (G_e, 1)) if G_e > 1 else pos_tok

    # --- BertEmbeddings: comb_proj + add + LayerNorm (fused, bf16 out) ---
    h = pallas_embed(embed, params["comb_w"], params["comb_b"], pos_tok_tile,
                     params["emb_ln_g"], params["emb_ln_b"], tm=tm_e)

    # --- extended attention mask: (1 - mask) * (-1e9), added to scores in f32 ---
    mask_bias = ((1.0 - mask.astype(jnp.float32)) * NEG_BIG).reshape(B, 1, S)

    layers = params["layers"]
    if not layers:
        # TODO(synk): encoder-less (n_layers == 0) path not implemented.
        raise NotImplementedError("n_layers must be >= 1")

    # --- encoder layers: fused attention block + tiled fused FFN block;
    #     fc(H->1) is fused into the last layer's FFN finalize ---
    logits = None
    for li, layer in enumerate(layers):
        h = pallas_attention_block(h, mask_bias, layer, B=B, S=S, nh=nh)
        if li == len(layers) - 1:
            h, logits = pallas_ffn_block(h, layer, params["fc_w"], params["fc_b"])
        else:
            h = pallas_ffn_block(h, layer)

    # sigmoid is defined but NOT applied in the reference forward
    return logits.reshape(B, S)


# ----------------------------- demo -----------------------------

if __name__ == "__main__":
    B, S = 2, 8
    cfg = dict(
        hidden_dim=48,     # divisible by 3 (embedding split) and by n_heads
        n_heads=2,
        n_layers=2,
        n_test=10,
        n_questions=20,
        n_tag=5,
        max_seq_len=S,
        intermediate=3072,  # BertConfig default intermediate_size
    )

    key = jax.random.PRNGKey(0)
    pkey, ikey = jax.random.split(key)
    params = init_params(pkey, cfg)

    ks = jax.random.split(ikey, 5)
    test = jax.random.randint(ks[0], (B, S), 0, cfg["n_test"] + 1)
    question = jax.random.randint(ks[1], (B, S), 0, cfg["n_questions"] + 1)
    tag = jax.random.randint(ks[2], (B, S), 0, cfg["n_tag"] + 1)
    interaction = jax.random.randint(ks[3], (B, S), 0, 3)
    mask = (jax.random.uniform(ks[4], (B, S)) > 0.3).astype(jnp.int32)
    mask = mask.at[:, 0].set(1)   # keep at least one valid key position per row

    out = bert_forward(params, test, question, tag, mask, interaction, cfg)
    out = jax.block_until_ready(out)
    assert out.shape == (B, S) and out.dtype == jnp.float32
    print("KERNEL_OK")
</pallas_src>

<mosaic_0001>
module attributes {stable_mosaic.version = 11 : i64} {
  func.func @_embed_kernel(%arg0: i32, %arg1: memref<8x64xbf16, #tpu.memory_space<vmem>>, %arg2: memref<64x48xbf16, #tpu.memory_space<vmem>>, %arg3: memref<1x48xf32, #tpu.memory_space<vmem>>, %arg4: memref<8x48xf32, #tpu.memory_space<vmem>>, %arg5: memref<1x48xf32, #tpu.memory_space<vmem>>, %arg6: memref<1x48xf32, #tpu.memory_space<vmem>>, %arg7: memref<8x48xbf16, #tpu.memory_space<vmem>>) attributes {dimension_semantics = [#tpu.dimension_semantics<parallel>], iteration_bounds = array<i64: 2>, scalar_prefetch = 0 : i64, scratch_operands = 0 : i64, tpu.core_type = #tpu.core_type<tc>, window_params = [{transform_indices = @transform_0, window_bounds = array<i64: 8, 64>}, {pipeline_mode = #tpu.pipeline_mode<synchronous>, transform_indices = @transform_1, window_bounds = array<i64: 64, 48>}, {pipeline_mode = #tpu.pipeline_mode<synchronous>, transform_indices = @transform_2, window_bounds = array<i64: 1, 48>}, {pipeline_mode = #tpu.pipeline_mode<synchronous>, transform_indices = @transform_3, window_bounds = array<i64: 8, 48>}, {pipeline_mode = #tpu.pipeline_mode<synchronous>, transform_indices = @transform_4, window_bounds = array<i64: 1, 48>}, {pipeline_mode = #tpu.pipeline_mode<synchronous>, transform_indices = @transform_5, window_bounds = array<i64: 1, 48>}, {transform_indices = @transform_6, window_bounds = array<i64: 8, 48>}]} {
    %c0 = arith.constant 0 : index
    %c0_0 = arith.constant 0 : index
    %0 = vector.load %arg1[%c0, %c0_0] : memref<8x64xbf16, #tpu.memory_space<vmem>>, vector<8x64xbf16>
    %c0_1 = arith.constant 0 : index
    %c0_2 = arith.constant 0 : index
    %1 = vector.load %arg2[%c0_1, %c0_2] : memref<64x48xbf16, #tpu.memory_space<vmem>>, vector<64x48xbf16>
    %cst = arith.constant dense<0.000000e+00> : vector<8x48xf32>
    %2 = tpu.matmul %0, %1, %cst {dimension_numbers = #tpu.dot_dimension_numbers<[1], [0], [0], [1], [0, 0, 1, 1], [], []>} : vector<8x64xbf16>, vector<64x48xbf16>, vector<8x48xf32> -> vector<8x48xf32>
    %c0_3 = arith.constant 0 : index
    %c0_4 = arith.constant 0 : index
    %3 = vector.load %arg3[%c0_3, %c0_4] : memref<1x48xf32, #tpu.memory_space<vmem>>, vector<1x48xf32>
    %4 = vector.broadcast %3 : vector<1x48xf32> to vector<8x48xf32>
    %5 = arith.addf %2, %4 : vector<8x48xf32>
    %c0_5 = arith.constant 0 : index
    %c0_6 = arith.constant 0 : index
    %6 = vector.load %arg4[%c0_5, %c0_6] : memref<8x48xf32, #tpu.memory_space<vmem>>, vector<8x48xf32>
    %7 = arith.addf %5, %6 : vector<8x48xf32>
    %c0_7 = arith.constant 0 : index
    %c0_8 = arith.constant 0 : index
    %8 = vector.load %arg5[%c0_7, %c0_8] : memref<1x48xf32, #tpu.memory_space<vmem>>, vector<1x48xf32>
    %c0_9 = arith.constant 0 : index
    %c0_10 = arith.constant 0 : index
    %9 = vector.load %arg6[%c0_9, %c0_10] : memref<1x48xf32, #tpu.memory_space<vmem>>, vector<1x48xf32>
    %cst_11 = arith.constant dense<0.000000e+00> : vector<8xf32>
    %10 = vector.multi_reduction <add>, %7, %cst_11 [1] : vector<8x48xf32> to vector<8xf32>
    %11 = vector.shape_cast %10 : vector<8xf32> to vector<8x1xf32>
    %cst_12 = arith.constant 4.800000e+01 : f32
    %12 = vector.broadcast %cst_12 : f32 to vector<8x1xf32>
    %13 = arith.divf %11, %12 : vector<8x1xf32>
    %14 = vector.broadcast %13 : vector<8x1xf32> to vector<8x48xf32>
    %15 = arith.subf %7, %14 : vector<8x48xf32>
    %16 = arith.mulf %15, %15 : vector<8x48xf32>
    %cst_13 = arith.constant dense<0.000000e+00> : vector<8xf32>
    %17 = vector.multi_reduction <add>, %16, %cst_13 [1] : vector<8x48xf32> to vector<8xf32>
    %18 = vector.shape_cast %17 : vector<8xf32> to vector<8x1xf32>
    %cst_14 = arith.constant 4.800000e+01 : f32
    %19 = vector.broadcast %cst_14 : f32 to vector<8x1xf32>
    %20 = arith.divf %18, %19 : vector<8x1xf32>
    %21 = vector.broadcast %13 : vector<8x1xf32> to vector<8x48xf32>
    %22 = arith.subf %7, %21 : vector<8x48xf32>
    %cst_15 = arith.constant 9.99999996E-13 : f32
    %23 = vector.broadcast %cst_15 : f32 to vector<8x1xf32>
    %24 = arith.addf %20, %23 : vector<8x1xf32>
    %25 = math.rsqrt %24 : vector<8x1xf32>
    %26 = vector.broadcast %25 : vector<8x1xf32> to vector<8x48xf32>
    %27 = arith.mulf %22, %26 : vector<8x48xf32>
    %28 = vector.broadcast %8 : vector<1x48xf32> to vector<8x48xf32>
    %29 = arith.mulf %27, %28 : vector<8x48xf32>
    %30 = vector.broadcast %9 : vector<1x48xf32> to vector<8x48xf32>
    %31 = arith.addf %29, %30 : vector<8x48xf32>
    %32 = arith.truncf %31 : vector<8x48xf32> to vector<8x48xbf16>
    %c0_16 = arith.constant 0 : index
    %c0_17 = arith.constant 0 : index
    %33 = vector.load %arg7[%c0_16, %c0_17] : memref<8x48xbf16, #tpu.memory_space<vmem>>, vector<8x48xbf16>
    tpu.vector_store %arg7[%c0_16, %c0_17], %32 {strides = array<i32>} : memref<8x48xbf16, #tpu.memory_space<vmem>>, vector<8x48xbf16>,
    return
  }
  func.func @transform_0(%arg0: i32) -> (i32, i32) {
    %c0_i32 = arith.constant 0 : i32
    %c0_i32_0 = arith.constant 0 : i32
    return %arg0, %c0_i32 : i32, i32
  }
  func.func @transform_1(%arg0: i32) -> (i32, i32) {
    %c0_i32 = arith.constant 0 : i32
    %c0_i32_0 = arith.constant 0 : i32
    %c0_i32_1 = arith.constant 0 : i32
    return %c0_i32, %c0_i32_0 : i32, i32
  }
  func.func @transform_2(%arg0: i32) -> (i32, i32) {
    %c0_i32 = arith.constant 0 : i32
    %c0_i32_0 = arith.constant 0 : i32
    %c0_i32_1 = arith.constant 0 : i32
    return %c0_i32, %c0_i32_0 : i32, i32
  }
  func.func @transform_3(%arg0: i32) -> (i32, i32) {
    %c0_i32 = arith.constant 0 : i32
    %c0_i32_0 = arith.constant 0 : i32
    %c0_i32_1 = arith.constant 0 : i32
    return %c0_i32, %c0_i32_0 : i32, i32
  }
  func.func @transform_4(%arg0: i32) -> (i32, i32) {
    %c0_i32 = arith.constant 0 : i32
    %c0_i32_0 = arith.constant 0 : i32
    %c0_i32_1 = arith.constant 0 : i32
    return %c0_i32, %c0_i32_0 : i32, i32
  }
  func.func @transform_5(%arg0: i32) -> (i32, i32) {
    %c0_i32 = arith.constant 0 : i32
    %c0_i32_0 = arith.constant 0 : i32
    %c0_i32_1 = arith.constant 0 : i32
    return %c0_i32, %c0_i32_0 : i32, i32
  }
  func.func @transform_6(%arg0: i32) -> (i32, i32) {
    %c0_i32 = arith.constant 0 : i32
    %c0_i32_0 = arith.constant 0 : i32
    return %arg0, %c0_i32 : i32, i32
  }
}

</mosaic_0001>

<bundles_post_ra>
// kernel: tpu_custom_call.1
= control target key start
LH: loop header
LB: loop body
LE: loop exit
PB: predicated region body
PF: predicated region fallthrough
CT: control target
= control target key end

     0   :  { %11 = vsyncpa [#allocation3], 0  ;;  %s749_s0 = inlined_call_operand.vmem [shape: bf16[16,64], index: 0, kind: input, shape index: {}]   ;;  %s750_s1 = inlined_call_operand.vmem [shape: bf16[64,48], index: 1, kind: input, shape index: {}]   ;;  %s751_s2 = inlined_call_operand.vmem [shape: f32[1,48], index: 2, kind: input, shape index: {}]   ;;  %s752_s3 = inlined_call_operand.vmem [shape: f32[8,48], index: 3, kind: input, shape index: {}]   ;;  %s753_s4 = inlined_call_operand.vmem [shape: f32[1,48], index: 4, kind: input, shape index: {}]   ;;  %s754_s5 = inlined_call_operand.vmem [shape: f32[1,48], index: 5, kind: input, shape index: {}]   ;;  %s755_s6 = inlined_call_operand.hbm [shape: bf16[16,48], index: 6, kind: output, shape index: {}]  }
   0x1   :  { %13 = vsyncpa [#allocation3 + $0x1], 0  ;;  %s625_s21 = smov 0   ;;  %s627_s22 = smov 0  }
   0x2   :  { %s629_s23 = smov 0   ;;  %s631_s24 = smov 0  }
   0x3 LB: > { %s646_s25 = sadd.s32 4294967295, %s585_s24   ;;  %s441_s26 = sadd.s32 4294967294, %s585_s24   ;;  %s585_s24 = sphi %s631_s24, %s761_s24   ;;  %s581_s23 = sphi %s629_s23, %s760_s23   ;;  %s577_s22 = sphi %s627_s22, %s759_s22   ;;  %s573_s21 = sphi %s625_s21, %s758_s21  }
   0x4   : > { %s650_s27 = sadd.s32 1, %s585_s24   ;;  %s157_s28 = sadd.s32 1, %s581_s23 }
   0x5   : > { %s154_s29 = ssub.s32 %s585_s24, %s650_s27  ;;  %p167_p0 = scmp.ne.s32.totalorder %s581_s23, %s577_s22 }
   0x6   : > { %p155_p1 = scmp.eq.s32.totalorder %s154_s29, 0  ;;  %p168_p2 = scmp.eq.s32.totalorder %s646_s25, 1 }
   0x7   : > { %p173_p3 = scmp.ne.s32.totalorder %s577_s22, %s573_s21  ;;  %p174_p4 = scmp.eq.s32.totalorder %s441_s26, 1 }
   0x8   : > { %s661_s30 = scalar_select %p155_p1, %s581_s23, %s157_s28  }
   0x9   : > { %p663_p5 = por %p168_p2, %p167_p0  ;;  %p667_p6 = por %p174_p4, %p173_p3 }
   0xa   : > { %p444_p7 = scmp.ge.s32.totalorder %s585_s24, 1  ;;  %p214_p8 = scmp.lt.s32.totalorder %s585_s24, 3 }
   0xc   : > { %p215_p9 = pnand %p444_p7, %p214_p8 }
   0xd   : > { %v517_v0 = vld [vmem:[%s750_s1] sm:$0xff] (!%p215_p9)   ;;  %v587_v1 = vmov (!%p215_p9), 0.0   ;;  %v518_v2 = vld [vmem:[%s750_s1 + $0x8] sm:$0xff] (!%p215_p9)   ;;  %vm588_vm0 = vmmov (!%p215_p9), 0   ;;  %p243_p10 = scmp.lt.s32.totalorder (!%p215_p9), %s646_s25, 1  ;;  %v519_v3 = vld [vmem:[%s750_s1 + $0x10] sm:$0xff] (!%p215_p9)  }
   0xe   : > { %218 = sbr.rel (%p215_p9) target bundleno = 575 (0x23f), region = 44  ;;  %464 = vmatprep.subr.bf16.mxu0 (!%p215_p9), %v587_v1  ;;  %472 = vmatprep.mubr.msk.bf16.mxu0 (!%p215_p9), %vm588_vm0, %v587_v1  ;;  %v520_v4 = vld [vmem:[%s750_s1 + $0x18] sm:$0xff] (!%p215_p9)   ;;  %vm288_vm1 = vcmask (!%p215_p9), 523264   ;;  %v447_v6 = vld [vmem:[%s751_s2] ss:$0 sm:$0xff] (!%p215_p9)  ;;  %vm336_vm2 = vcmask (!%p215_p9), 392192  }
   0xf   : > { %465 = vmatpush3.bf16.msra.mxu0 (!%p215_p9), %v517_v0  ;;  %v332_v8 = vld [vmem:[%s752_s3] sm:$0xff] (!%p215_p9)  ;;  %s240_s11 = sand.u32 (!%p215_p9), 1, %s577_s22   ;;  %s456_s17 = sshll.u32 (!%p215_p9), %s646_s25, 6  ;;  %vm366_vm3 = vcmask (!%p215_p9), 388096  }
  0x10   : > { %466 = vmatprep.subr.bf16.mxu0 (!%p215_p9), %v587_v1  ;;  %s445_s12 = sshll.u32 (!%p215_p9), %s240_s11, 2  ;;  %v453_v24 = vld [vmem:[%s753_s4] ss:$0 sm:$0xff] (!%p215_p9)  ;;  %s707_s28 = scalar_lea.hbm (!%p215_p9), %s755_s6, %s456_s17 }
  0x11   : > { %v454_v26 = vld [vmem:[%s754_s5] ss:$0 sm:$0xff] (!%p215_p9)  ;;  %s242_s18 = scalar_lea.vmem (!%p215_p9), [#allocation2], %s445_s12  ;;  %s369_s29 = scalar_lea.sflag (!%p215_p9), [#allocation3], %s240_s11 }
  0x12   : > { %s382_s19 = sshll.u32 (!%p215_p9), %s242_s18, 4  ;;  %s709_s19 = int_to_ptr.vmem [resolvable:$true] %s382_s19 }
  0x13   : > { %467 = vmatpush3.bf16.msra.mxu0 (!%p215_p9), %v518_v2  ;;  %s523_s9 = scalar_lea.vmem (!%p215_p9), %s709_s19, 64 }
  0x14   : > { %468 = vmatprep.subr.bf16.mxu0 (!%p215_p9), %v587_v1  ;;  %p524_p11 = scmp.ne.s32.totalorder (!%p215_p9), %s709_s19, %s523_s9 }
  0x15   : > { %s244_s13 = scalar_select %p243_p10, %s646_s25, 1 }
  0x16   : > { %p525_p12 = pnand %p524_p11, %p663_p5  ;;  %s589_s25 = smov [#allocation2]  }
  0x17   : > { %s446_s16 = sshll.u32 %s244_s13, 2  ;;  %469 = vmatpush3.bf16.msra.mxu0 %v519_v3  ;;  %s527_s10 = sshll.u32 %s589_s25, 4  ;;  %s528_s10 = int_to_ptr.vmem [resolvable:$false] %s527_s10 }
  0x18   : > { %470 = vmatprep.subr.bf16.mxu0 %v587_v1  ;;  %s246_s26 = scalar_lea.vmem %s749_s0, %s446_s16  ;;  %p526_p13 = pneg %p525_p12 }
  0x19   : > { %v248_v5 = vld [vmem:[%s246_s26] sm:$0xf]  ;;  %s529_s12 = scalar_lea.vmem %s528_s10, 128  ;;  %p530_p0 = scmp.lt.s32.totalorder %s709_s19, %s528_s10 }
  0x1a   : > { %p531_p1 = scmp.lt.s32.totalorder %s529_s12, %s523_s9 }
  0x1b   : > { %471 = vmatpush3.bf16.msra.mxu0 %v520_v4 }
  0x1c   : > { %p532_p2 = por %p531_p1, %p530_p0 }
  0x1e   : > { %473 = vmatmul.mubr.msk.bf16.vlgmr.msra.gmra.mrb[0].mxu0 %vm288_vm1, %v248_v5  ;;  %p533_p3 = pnand %p532_p2, %p526_p13 }
  0xf1   : > { %v326_v7 = vpop.f32.mrb[0].mxu0 }
  0xf2   : > { %v327_v9 = vadd.f32 %v447_v6, %v326_v7  ;;  %v474_v10 = vpop.f32.mrb[1].mxu0 }
  0xf3   : > { %v329_v11 = vpop.f32.mrb[2].mxu0 }
  0xf4   : > { %v475_v12 = vpop.f32.mrb[3].mxu0  ;;  %v333_v13 = vadd.f32 %v332_v8, %v327_v9 }
  0xf6   : > { %v337_v14 = vsel %vm336_vm2, %v333_v13, 0.0 }
  0xf7   : > { %338 = vadd.xlane.f32.xlu0 %v337_v14 }
 0x184   : > { %v339_v15 = vpop.xlane.xlu0 %338 }
 0x185   : > { %v341_v16 = vmul.f32 0.020833334, %v339_v15 }
 0x187   : > { %v342_v17 = vsub.f32 %v333_v13, %v341_v16 }
 0x189   : > { %v343_v18 = vmul.f32 %v342_v17, %v342_v17 }
 0x18b   : > { %v344_v19 = vsel %vm336_vm2, %v343_v18, 0.0 }
 0x18c   : > { %345 = vadd.xlane.f32.xlu0 %v344_v19 }
 0x219   : > { %v346_v20 = vpop.xlane.xlu0 %345 }
 0x21a   : > { %v347_v21 = vmul.f32 0.020833334, %v346_v20 }
 0x21c   : > { %v348_v22 = vadd.f32 1e-12, %v347_v21 }
 0x21e   : > { %521 = vrsqrt.f32 %v348_v22 }
 0x228   : > { %v522_v23 = vpop.eup %521 }
 0x229   : > { %v350_v25 = vmul.f32 %v522_v23, %v342_v17 }
 0x22b   : > { %v357_v27 = vmul.f32 %v453_v24, %v350_v25 }
 0x22d   : > { %v364_v28 = vadd.f32 %v454_v26, %v357_v27 }
 0x22f   : > { %v365_v29 = vpack.c.bf16 %v364_v28, %v364_v28 }
 0x231   : > { %367 = vst.msk [vmem:[%s242_s18] sm:$0xf] %vm366_vm3, %v365_v29 }
 0x232   : > { %536 = shalt.err (!%p533_p3)
}
 0x233   : > { %s537_s11 = scalar_lea.hbm %s707_s28, 64  ;;  %s541_s15 = scalar_lea.hbm %s755_s6, 128 }
 0x234   : > { %p538_p4 = scmp.ne.s32.totalorder %s707_s28, %s537_s11  ;;  %p542_p9 = scmp.lt.u32.totalorder %s707_s28, %s755_s6 }
 0x235   : > { %p543_p10 = scmp.lt.u32.totalorder %s541_s15, %s537_s11  ;;  %p545_p12 = scmp.lt.u32.totalorder %s537_s11, %s707_s28 }
 0x236   : > { %p539_p7 = pnand %p538_p4, %p663_p5 }
 0x237   : > { %p544_p11 = por %p543_p10, %p542_p9 }
 0x238   : > { %p540_p8 = pneg %p539_p7 }
 0x239   : > { %p546_p13 = por %p545_p12, %p544_p11 }
 0x23b   : > { %p547_p0 = pnand %p546_p13, %p540_p8 }
 0x23d   : > { %550 = shalt.err (!%p547_p0)
}
 0x23e   : > { %476 = dma.vmem_to_hbm [thread:$0]  (%p663_p5), %s709_s19, 64, %s707_s28, %s369_s29  }
 0x23f PF: > { %p482_p1 = scmp.ge.s32.totalorder %s585_s24, 2  ;;  %s394_s18 = sand.u32 1, %s573_s21  }
 0x240   : > { %s395_s20 = scalar_lea.sflag [#allocation3], %s394_s18 }
 0x241   : > { %p479_p2 = pnand %p482_p1, %p667_p6 }
 0x243   : > { %568 = dma.done.wait (!%p479_p2), %s395_s20, 64  }
 0x244   : > { %570 = vsyncadd (!%p479_p2), %s395_s20, 4294967232  ;;  %p16_p3 = scmp.ge.s32.totalorder %s650_s27, 4   ;;  %s758_s21 = smov %s577_s22 }
 0x245   : > { %s759_s22 = smov %s581_s23  ;;  %s760_s23 = smov %s661_s30 }
 0x246   : > { %s761_s24 = smov %s650_s27  ;;  %18 = sbr.rel (!%p16_p3) target bundleno = 3 (0x3), region = 79 }
 0x24d   :  { %400 = vsyncpa [#allocation3], 1 }
 0x24e   :  { %402 = vsyncpa [#allocation3 + $0x1], 1 }

</bundles_post_ra>
